<compile_context>
chip_gen: v6e
topology: v6e:2x2x1
jax: 0.10.0
libtpu: 0.0.40
codegen_flags: <defaults>
</compile_context>

<pallas_src>
import jax
import jax.numpy as jnp
from jax.experimental import pallas as pl
from jax.experimental.pallas import tpu as pltpu

IN_FEATURES = 34
HIDDEN = 64
OUT_FEATURES = 1
DEFAULT_TB = 1024  # batch-tile rows (multiple of 8); sized for v7x VMEM headroom


def _round_up(n, m):
    return ((n + m - 1) // m) * m


def mlp_kernel(x_ref, w1_ref, b1_ref, w2_ref, b2_ref, o_ref):
    # One batch tile per grid step: x (TB, 34); weights stay resident in VMEM.
    x = x_ref[...]                                                    # (TB, 34) f32
    h = jnp.dot(x, w1_ref[...], preferred_element_type=jnp.float32)   # MXU -> (TB, 64)
    h = jnp.maximum(h + b1_ref[...], 0.0)                             # bias + ReLU on VPU
    # Dropout(p=0.1): inference mode -> identity.
    # TODO(synk): training-mode dropout (pltpu.prng_random_bits mask) not emitted here.
    # Second linear (64 -> 1) as VPU multiply + lane reduction instead of a 1-column MXU op.
    logits = jnp.sum(h * w2_ref[...], axis=-1, keepdims=True)         # (TB, 1)
    o_ref[...] = logits + b2_ref[0, 0]                                # scalar bias from SMEM


def binary_classification_forward(x, w1, b1, w2, b2, *, tb=DEFAULT_TB):
    B = x.shape[0]
    # Batch tile: multiple of 8 sublanes, capped at `tb`, no bigger than the padded batch.
    TB = min(tb, _round_up(B, 8))
    Bp = pl.cdiv(B, TB) * TB
    if Bp != B:
        # Pad the ragged last tile on the host side; padded rows are sliced off below.
        x = jnp.pad(x, ((0, Bp - B), (0, 0)))

    w2_row = w2.reshape(1, HIDDEN)   # (64, 1) -> (1, 64) lane-major row for the VPU reduce
    b2_s = b2.reshape(1, 1)

    grid = (Bp // TB,)
    flops = 2 * Bp * IN_FEATURES * HIDDEN + 3 * Bp * HIDDEN
    bytes_accessed = 4 * (Bp * IN_FEATURES                 # x read
                          + IN_FEATURES * HIDDEN + HIDDEN  # w1, b1
                          + HIDDEN + 1                     # w2, b2
                          + Bp * OUT_FEATURES)             # output write

    out = pl.pallas_call(
        mlp_kernel,
        out_shape=jax.ShapeDtypeStruct((Bp, OUT_FEATURES), jnp.float32),
        grid=grid,
        in_specs=[
            pl.BlockSpec((TB, IN_FEATURES), lambda i: (i, 0)),        # streamed batch tile
            pl.BlockSpec((IN_FEATURES, HIDDEN), lambda i: (0, 0)),    # resident weights
            pl.BlockSpec((1, HIDDEN), lambda i: (0, 0)),              # resident b1
            pl.BlockSpec((1, HIDDEN), lambda i: (0, 0)),              # resident w2 row
            pl.BlockSpec(memory_space=pltpu.MemorySpace.SMEM),        # scalar b2 in SMEM
        ],
        out_specs=pl.BlockSpec((TB, OUT_FEATURES), lambda i: (i, 0)),
        compiler_params=pltpu.CompilerParams(
            dimension_semantics=("parallel",)),  # v7x: shard batch tiles across both TCs
        cost_estimate=pl.CostEstimate(
            flops=flops, transcendentals=0, bytes_accessed=bytes_accessed),
    )(x, w1, b1, w2_row, b2_s)
    return out[:B]


def init_params(key):
    # Deterministic init mimicking PyTorch nn.Linear default: U(-1/sqrt(fan_in), +1/sqrt(fan_in)).
    k1, k2, k3, k4 = jax.random.split(key, 4)
    bound1 = 1.0 / jnp.sqrt(IN_FEATURES)
    bound2 = 1.0 / jnp.sqrt(HIDDEN)
    # Stored as (in, out) so the kernel computes x @ W (PyTorch stores (out, in) and does x @ W.T).
    w1 = jax.random.uniform(k1, (IN_FEATURES, HIDDEN), jnp.float32, -bound1, bound1)
    b1 = jax.random.uniform(k2, (1, HIDDEN), jnp.float32, -bound1, bound1)
    w2 = jax.random.uniform(k3, (HIDDEN, OUT_FEATURES), jnp.float32, -bound2, bound2)
    b2 = jax.random.uniform(k4, (1, OUT_FEATURES), jnp.float32, -bound2, bound2)
    return w1, b1, w2, b2


def reference_forward(x, w1, b1, w2, b2):
    h = jnp.maximum(x @ w1 + b1, 0.0)
    return h @ w2 + b2


if __name__ == "__main__":
    key = jax.random.PRNGKey(0)
    pkey, xkey, xkey2 = jax.random.split(key, 3)
    w1, b1, w2, b2 = init_params(pkey)

    # Small-shape check (single tile).
    B = 8
    x = jax.random.normal(xkey, (B, IN_FEATURES), jnp.float32)
    out = jax.block_until_ready(binary_classification_forward(x, w1, b1, w2, b2))
    ref = reference_forward(x, w1, b1, w2, b2)
    assert out.shape == (B, OUT_FEATURES)
    assert jnp.allclose(out, ref, atol=1e-5, rtol=1e-5)

    # Multi-tile + ragged-batch check (exercises pipelined grid and host-side padding).
    B2 = 300
    x2 = jax.random.normal(xkey2, (B2, IN_FEATURES), jnp.float32)
    out2 = jax.block_until_ready(binary_classification_forward(x2, w1, b1, w2, b2, tb=128))
    ref2 = reference_forward(x2, w1, b1, w2, b2)
    assert out2.shape == (B2, OUT_FEATURES)
    assert jnp.allclose(out2, ref2, atol=1e-5, rtol=1e-5)

    print("KERNEL_OK")
</pallas_src>

<mosaic_0001>
module attributes {stable_mosaic.version = 11 : i64} {
  func.func @mlp_kernel(%arg0: i32, %arg1: memref<8x34xf32, #tpu.memory_space<vmem>>, %arg2: memref<34x64xf32, #tpu.memory_space<vmem>>, %arg3: memref<1x64xf32, #tpu.memory_space<vmem>>, %arg4: memref<1x64xf32, #tpu.memory_space<vmem>>, %arg5: memref<1x1xf32, #tpu.memory_space<smem>>, %arg6: memref<8x1xf32, #tpu.memory_space<vmem>>) attributes {dimension_semantics = [#tpu.dimension_semantics<parallel>], iteration_bounds = array<i64: 1>, scalar_prefetch = 0 : i64, scratch_operands = 0 : i64, tpu.core_type = #tpu.core_type<tc>, window_params = [{transform_indices = @transform_0, window_bounds = array<i64: 8, 34>}, {pipeline_mode = #tpu.pipeline_mode<synchronous>, transform_indices = @transform_1, window_bounds = array<i64: 34, 64>}, {pipeline_mode = #tpu.pipeline_mode<synchronous>, transform_indices = @transform_2, window_bounds = array<i64: 1, 64>}, {pipeline_mode = #tpu.pipeline_mode<synchronous>, transform_indices = @transform_3, window_bounds = array<i64: 1, 64>}, {transform_indices = @transform_4, window_bounds = array<i64: 1, 1>}, {transform_indices = @transform_5, window_bounds = array<i64: 8, 1>}]} {
    %c0 = arith.constant 0 : index
    %c0_0 = arith.constant 0 : index
    %0 = vector.load %arg1[%c0, %c0_0] : memref<8x34xf32, #tpu.memory_space<vmem>>, vector<8x34xf32>
    %c0_1 = arith.constant 0 : index
    %c0_2 = arith.constant 0 : index
    %1 = vector.load %arg2[%c0_1, %c0_2] : memref<34x64xf32, #tpu.memory_space<vmem>>, vector<34x64xf32>
    %cst = arith.constant dense<0.000000e+00> : vector<8x64xf32>
    %2 = tpu.matmul %0, %1, %cst {dimension_numbers = #tpu.dot_dimension_numbers<[1], [0], [0], [1], [0, 0, 1, 1], [], []>} : vector<8x34xf32>, vector<34x64xf32>, vector<8x64xf32> -> vector<8x64xf32>
    %c0_3 = arith.constant 0 : index
    %c0_4 = arith.constant 0 : index
    %3 = vector.load %arg3[%c0_3, %c0_4] : memref<1x64xf32, #tpu.memory_space<vmem>>, vector<1x64xf32>
    %4 = vector.broadcast %3 : vector<1x64xf32> to vector<8x64xf32>
    %5 = arith.addf %2, %4 : vector<8x64xf32>
    %cst_5 = arith.constant 0.000000e+00 : f32
    %6 = vector.broadcast %cst_5 : f32 to vector<8x64xf32>
    %7 = arith.maximumf %5, %6 : vector<8x64xf32>
    %c0_6 = arith.constant 0 : index
    %c0_7 = arith.constant 0 : index
    %8 = vector.load %arg4[%c0_6, %c0_7] : memref<1x64xf32, #tpu.memory_space<vmem>>, vector<1x64xf32>
    %9 = vector.broadcast %8 : vector<1x64xf32> to vector<8x64xf32>
    %10 = arith.mulf %7, %9 : vector<8x64xf32>
    %cst_8 = arith.constant dense<0.000000e+00> : vector<8xf32>
    %11 = vector.multi_reduction <add>, %10, %cst_8 [1] : vector<8x64xf32> to vector<8xf32>
    %12 = vector.shape_cast %11 : vector<8xf32> to vector<8x1xf32>
    %c0_9 = arith.constant 0 : index
    %c0_10 = arith.constant 0 : index
    %13 = memref.load %arg5[%c0_9, %c0_10] : memref<1x1xf32, #tpu.memory_space<smem>>
    %14 = vector.broadcast %13 : f32 to vector<8x1xf32>
    %15 = arith.addf %12, %14 : vector<8x1xf32>
    %c0_11 = arith.constant 0 : index
    %c0_12 = arith.constant 0 : index
    %16 = vector.load %arg6[%c0_11, %c0_12] : memref<8x1xf32, #tpu.memory_space<vmem>>, vector<8x1xf32>
    tpu.vector_store %arg6[%c0_11, %c0_12], %15 {strides = array<i32>} : memref<8x1xf32, #tpu.memory_space<vmem>>, vector<8x1xf32>,
    return
  }
  func.func @transform_0(%arg0: i32) -> (i32, i32) {
    %c0_i32 = arith.constant 0 : i32
    %c0_i32_0 = arith.constant 0 : i32
    return %arg0, %c0_i32 : i32, i32
  }
  func.func @transform_1(%arg0: i32) -> (i32, i32) {
    %c0_i32 = arith.constant 0 : i32
    %c0_i32_0 = arith.constant 0 : i32
    %c0_i32_1 = arith.constant 0 : i32
    return %c0_i32, %c0_i32_0 : i32, i32
  }
  func.func @transform_2(%arg0: i32) -> (i32, i32) {
    %c0_i32 = arith.constant 0 : i32
    %c0_i32_0 = arith.constant 0 : i32
    %c0_i32_1 = arith.constant 0 : i32
    return %c0_i32, %c0_i32_0 : i32, i32
  }
  func.func @transform_3(%arg0: i32) -> (i32, i32) {
    %c0_i32 = arith.constant 0 : i32
    %c0_i32_0 = arith.constant 0 : i32
    %c0_i32_1 = arith.constant 0 : i32
    return %c0_i32, %c0_i32_0 : i32, i32
  }
  func.func @transform_4(%arg0: i32) -> (i32, i32) {
    %c0_i32 = arith.constant 0 : i32
    %c0_i32_0 = arith.constant 0 : i32
    %c0_i32_1 = arith.constant 0 : i32
    return %c0_i32, %c0_i32_0 : i32, i32
  }
  func.func @transform_5(%arg0: i32) -> (i32, i32) {
    %c0_i32 = arith.constant 0 : i32
    %c0_i32_0 = arith.constant 0 : i32
    return %arg0, %c0_i32 : i32, i32
  }
}

</mosaic_0001>

<bundles_post_ra>
// kernel: tpu_custom_call.1
= control target key start
LH: loop header
LB: loop body
LE: loop exit
PB: predicated region body
PF: predicated region fallthrough
CT: control target
= control target key end

     0   :  { %11 = vsyncpa [#allocation4], 0  ;;  %s289_s0 = inlined_call_operand.hbm [shape: f32[8,34], index: 0, kind: input, shape index: {}]   ;;  %s290_s1 = inlined_call_operand.hbm [shape: f32[34,64], index: 1, kind: input, shape index: {}]   ;;  %s291_s2 = inlined_call_operand.vmem [shape: f32[1,64], index: 2, kind: input, shape index: {}]   ;;  %s292_s3 = inlined_call_operand.vmem [shape: f32[1,64], index: 3, kind: input, shape index: {}]   ;;  %s293_s4 = inlined_call_operand.<no memory space> [shape: f32[1,1], index: 4, kind: input, shape index: {}]   ;;  %s294_s5 = inlined_call_operand.vmem [shape: f32[8,1], index: 5, kind: output, shape index: {}]  }
   0x1   :  { %12 = vsyncpa [#allocation6], 0  ;;  %s235_s18 = smov [#allocation3]   ;;  %s236_s20 = smov [#allocation5]  }
   0x2   :  { %s19_s19 = sshll.u32 %s235_s18, 4  ;;  %s28_s21 = sshll.u32 %s236_s20, 4  ;;  %s20_s19 = int_to_ptr.vmem [resolvable:$true] %s19_s19  ;;  %s29_s21 = int_to_ptr.vmem [resolvable:$true] %s28_s21 }
   0x3   :  { %s199_s22 = scalar_lea.vmem %s20_s19, 128  ;;  %p204_p1 = scmp.lt.s32.totalorder %s20_s19, %s20_s19 }
   0x4   :  { %p200_p0 = scmp.ne.s32.totalorder %s20_s19, %s199_s22  ;;  %p205_p2 = scmp.lt.s32.totalorder %s199_s22, %s199_s22 }
   0x6   :  { %p206_p3 = por %p205_p2, %p204_p1 }
   0x8   :  { %p207_p4 = pnand %p206_p3, %p200_p0 }
   0xa   :  { %210 = shalt.err (!%p207_p4)
}
   0xb   :  { %22 = dma.hbm_to_vmem [thread:$0]  %s289_s0, 128, %s20_s19, [#allocation4]  }
   0xc   :  { %s219_s25 = scalar_lea.vmem %s29_s21, 640  ;;  %p224_p6 = scmp.lt.s32.totalorder %s29_s21, %s29_s21 }
   0xd   :  { %p220_p5 = scmp.ne.s32.totalorder %s29_s21, %s219_s25  ;;  %p225_p7 = scmp.lt.s32.totalorder %s219_s25, %s219_s25 }
   0xf   :  { %p226_p8 = por %p225_p7, %p224_p6 }
  0x11   :  { %p227_p9 = pnand %p226_p8, %p220_p5 }
  0x13   :  { %230 = shalt.err (!%p227_p9)
}
  0x14   :  { %s237_s26 = smov 128   ;;  %s238_s27 = smov 8  }
  0x15   :  { %34 = dma.hbm_to_vmem [thread:$0]  %s290_s1, 640, %s29_s21, [#allocation6], %s237_s26, %s237_s26, %s238_s27  }
  0x16   :  { %231 = dma.done.wait [#allocation4], 128  }
  0x17   :  { %232 = vsyncadd [#allocation4], 4294967168 }
  0x18   :  { %233 = dma.done.wait [#allocation6], 640  }
  0x19   :  { %234 = vsyncadd [#allocation6], 4294966656  ;;  %v239_v0 = vmov 0.0   ;;  %vm240_vm0 = vmmov 0   ;;  %vm64_vm1 = vcmask 1041408   ;;  %v51_v2 = vld [vmem:[#allocation5 + $0x18] sm:$0xff]  ;;  %v152_v15 = vstv %s293_s4 }
  0x1a   :  { %172 = vmatprep.subr.mxu0 %v239_v0  ;;  %182 = vmatprep.mubr.msk.f32.mxu0 %vm240_vm0, %v239_v0  ;;  %v52_v1 = vld [vmem:[#allocation5 + $0x20] sm:$0x3]  ;;  %v50_v3 = vld [vmem:[#allocation5 + $0x10] sm:$0xff]  ;;  %v49_v4 = vld [vmem:[#allocation5 + $0x8] sm:$0xff]  ;;  %vm60_vm2 = vcmask 277504   ;;  %vm147_vm3 = vcmask 523264  }
  0x1b   :  { %173 = vmatpush3.msk.msra.mxu0 %vm64_vm1, %v52_v1  ;;  %v48_v5 = vld [vmem:[#allocation5] sm:$0xff]  ;;  %v47_v6 = vld [vmem:[#allocation3] sm:$0xff]  ;;  %vm154_vm4 = vcmask 7168  }
  0x1c   :  { %174 = vmatprep.subr.mxu0 %v239_v0  ;;  %v162_v7 = vld [vmem:[%s291_s2] ss:$0 sm:$0xff] }
  0x1d   :  { %175 = vmatpush3.msra.mxu0 %v51_v2  ;;  %v165_v11 = vld [vmem:[%s292_s3] ss:$0 sm:$0xff] }
  0x1e   :  { %176 = vmatprep.subr.mxu0 %v239_v0 }
  0x1f   :  { %177 = vmatpush3.msra.mxu0 %v50_v3 }
  0x20   :  { %178 = vmatprep.subr.mxu0 %v239_v0 }
  0x21   :  { %179 = vmatpush3.msra.mxu0 %v49_v4 }
  0x22   :  { %180 = vmatprep.subr.mxu0 %v239_v0 }
  0x23   :  { %181 = vmatpush3.msra.mxu0 %v48_v5 }
  0x24   :  { %183 = vmatmul.mubr.msk.f32.vlgmr.msra.gmra.mxu0 %vm60_vm2, %v47_v6 }
  0xe4   :  { %v134_v8 = vpop.f32.mrf.mxu0 }
  0xe5   :  { %v135_v9 = vadd.f32 %v162_v7, %v134_v8 }
  0xe6   :  { %v184_v10 = vpop.f32.mrf.mxu0 }
  0xe7   :  { %v138_v12 = vmax.f32 %v135_v9, 0.0 }
  0xe9   :  { %v146_v13 = vmul.f32 %v165_v11, %v138_v12 }
  0xeb   :  { %v148_v14 = vsel %vm147_vm3, %v146_v13, 0.0 }
  0xec   :  { %149 = vadd.xlane.f32.xlu0 %v148_v14 }
 0x175   :  { %v150_v16 = vpop.xlane.xlu0 %149 }
 0x176   :  { %v153_v17 = vadd.f32 %v152_v15, %v150_v16 }
 0x178   :  { %155 = vst.msk [vmem:[%s294_s5] sm:$0xff] %vm154_vm4, %v153_v17 }
 0x179   :  { %160 = vsyncpa [#allocation4], 1 }
 0x17a   :  { %161 = vsyncpa [#allocation6], 1 }

</bundles_post_ra>
